<compile_context>
chip_gen: v7x
topology: tpu7x:2x2x1
jax: 0.10.0
libtpu: 0.0.40
codegen_flags: <defaults>
</compile_context>

<pallas_src>
import jax
import jax.numpy as jnp
from jax.experimental import pallas as pl
from jax.experimental.pallas import tpu as pltpu


def _loglinear_kernel(x_ref, w_ref, b_ref, o_ref):
    # x_ref: (tb, D) VMEM, native dtype (f32 or bf16), streamed per grid step.
    # w_ref: (D, 1) [MXU path] or (1, D) [VPU path] VMEM, resident.
    # b_ref: (1, 1) f32 SMEM scalar bias.
    # o_ref: (tb//128, 128) lane-dense slab, or (B, 1) on the small-batch path.
    x = x_ref[...]
    w = w_ref[...]
    if w.shape[-1] == 1:
        # Sub-f32 (bf16) inputs: native-dtype MXU matmul, f32 accumulation.
        acc = jnp.dot(x, w, preferred_element_type=jnp.float32)       # (tb, 1)
    else:
        # f32 inputs: exact f32 VPU multiply + XLU lane reduce.
        acc = jnp.sum(x.astype(jnp.float32) * w.astype(jnp.float32),
                      axis=-1, keepdims=True)                          # (tb, 1)
    acc = acc + b_ref[0, 0]
    # Sublane->lane repack to the lane-dense output slab (identity on (B,1)).
    o_ref[...] = acc.reshape(o_ref.shape).astype(o_ref.dtype)


def _vmem_capacity_bytes():
    try:
        return int(pltpu.get_tpu_info().vmem_capacity_bytes)
    except Exception:
        return 64 << 20  # conservative fallback (v7x per-core VMEM)


def _choose_block_rows(B, D, itemsize, vmem_cap, block_rows):
    if block_rows is not None:
        tb = max(128, (int(block_rows) // 128) * 128)
    else:
        # ~4-8 MiB of streamed input per tile reaches 85-90% of HBM roofline;
        # scale with the generation's VMEM (v7x 64 MiB -> 4 MiB tiles).
        budget = int(min(8 << 20, max(2 << 20, vmem_cap // 16)))
        tb = max(128, (budget // (D * itemsize) // 128) * 128)
    # Never larger than the 128-aligned batch extent (no block > array).
    tb = min(tb, max(128, (B // 128) * 128))
    # Megacore: keep at least 2 grid steps whenever the batch is large enough,
    # so both TensorCores on v7x get work.
    if B >= 256 and tb >= B:
        tb = max(128, ((B // 2) // 128) * 128)
    return tb


def loglinear_forward(x, weight, bias, *, block_rows=None):
    """LogLinear forward: x @ W.T + b.

    x: (B, D); weight: (1, D) (PyTorch nn.Linear layout); bias: (1,) -> (B, 1).
    Inputs stream at their native dtype (f32 or bf16); accumulation is f32.
    Note: output dtype follows promote(x, weight) (bf16 in -> bf16 out).
    """
    B, D = x.shape
    out_dtype = jnp.promote_types(x.dtype, weight.dtype)
    itemsize = x.dtype.itemsize
    bias2d = jnp.asarray(bias, dtype=jnp.float32).reshape(1, 1)

    # bf16/bf16 -> MXU path with a (D, 1) weight column; otherwise exact f32
    # VPU path with the (1, D) weight row. (TODO(synk): benchmark an
    # idle-MXU formulation for f32 on v7x as well.)
    use_mxu = (x.dtype == jnp.bfloat16 and weight.dtype == jnp.bfloat16)
    w_arg = weight.reshape(D, 1) if use_mxu else weight  # (D,1) or (1,D)

    cost = pl.CostEstimate(
        flops=2 * B * D,
        transcendentals=0,
        bytes_accessed=B * D * itemsize + D * weight.dtype.itemsize
        + B * jnp.dtype(out_dtype).itemsize)

    if B < 128:
        # Small-batch path: one tile, (B, 1) output (store shape irrelevant).
        return pl.pallas_call(
            _loglinear_kernel,
            out_shape=jax.ShapeDtypeStruct((B, 1), out_dtype),
            grid=(1,),
            in_specs=[
                pl.BlockSpec((B, D), lambda i: (0, 0)),
                pl.BlockSpec(w_arg.shape, lambda i: (0, 0)),
                pl.BlockSpec(memory_space=pltpu.SMEM),
            ],
            out_specs=pl.BlockSpec((B, 1), lambda i: (0, 0)),
            compiler_params=pltpu.CompilerParams(
                dimension_semantics=("arbitrary",)),
            cost_estimate=cost,
        )(x, w_arg, bias2d)

    vmem_cap = _vmem_capacity_bytes()
    tb = _choose_block_rows(B, D, itemsize, vmem_cap, block_rows)
    grid = (pl.cdiv(B, tb),)
    out_rows = pl.cdiv(B, 128)  # lane-dense output slab rows

    # Double-buffered native-dtype input + one f32 temp tile + margin.
    x_tile_bytes = tb * D * itemsize
    vmem_limit = 2 * x_tile_bytes + tb * D * 4 + (4 << 20)
    vmem_limit = int(max(16 << 20, min(vmem_limit, 3 * vmem_cap // 4)))

    out = pl.pallas_call(
        _loglinear_kernel,
        out_shape=jax.ShapeDtypeStruct((out_rows, 128), out_dtype),
        grid=grid,
        in_specs=[
            pl.BlockSpec((tb, D), lambda i: (i, 0)),        # x tile, streamed
            pl.BlockSpec(w_arg.shape, lambda i: (0, 0)),    # weight, resident
            pl.BlockSpec(memory_space=pltpu.SMEM),          # scalar bias
        ],
        out_specs=pl.BlockSpec((tb // 128, 128), lambda i: (i, 0)),
        compiler_params=pltpu.CompilerParams(
            dimension_semantics=("parallel",),              # megacore on v7x
            vmem_limit_bytes=vmem_limit,
        ),
        cost_estimate=cost,
    )(x, w_arg, bias2d)
    # Undo the lane-dense packing: (ceil(B/128), 128) -> (B, 1); padded tail
    # lanes (from ragged tiles) are sliced off here.
    return out.reshape(-1, 1)[:B]


def loglinear_reference(x, weight, bias):
    # Pure-JAX reference with nn.Linear semantics; exact f32 math (elementwise
    # product + sum avoids XLA's default matmul precision on TPU).
    xf = x.astype(jnp.float32)
    wf = weight.astype(jnp.float32)
    return jnp.sum(xf * wf, axis=-1, keepdims=True) + bias.astype(jnp.float32)


if __name__ == "__main__":
    key = jax.random.PRNGKey(0)
    k_x, k_w, k_b, k_x2, k_x3 = jax.random.split(key, 5)

    # --- Test 1: small shapes matching the module (single-tile path) ---
    batch, embedding_dim = 8, 128
    bound = 1.0 / (embedding_dim ** 0.5)
    weight = jax.random.uniform(k_w, (1, embedding_dim), jnp.float32,
                                minval=-bound, maxval=bound)
    bias = jax.random.uniform(k_b, (1,), jnp.float32,
                              minval=-bound, maxval=bound)
    x = jax.random.normal(k_x, (batch, embedding_dim), jnp.float32)

    out = jax.block_until_ready(loglinear_forward(x, weight, bias))
    ref = loglinear_reference(x, weight, bias)
    assert out.shape == (batch, 1), out.shape
    assert jnp.allclose(out, ref, atol=1e-5, rtol=1e-5)

    # --- Test 2: gridded lane-dense path with ragged tail (B=300, tb=128) ---
    B2, D2 = 300, 64
    x2 = jax.random.normal(k_x2, (B2, D2), jnp.float32)
    w2 = jax.random.uniform(k_w, (1, D2), jnp.float32, minval=-0.1, maxval=0.1)
    out2 = jax.block_until_ready(loglinear_forward(x2, w2, bias, block_rows=128))
    ref2 = loglinear_reference(x2, w2, bias)
    assert out2.shape == (B2, 1), out2.shape
    assert jnp.allclose(out2, ref2, atol=1e-5, rtol=1e-5)

    # Same shapes through the automatic (byte-budgeted, megacore-aware) tiler.
    out2b = jax.block_until_ready(loglinear_forward(x2, w2, bias))
    assert jnp.allclose(out2b, ref2, atol=1e-5, rtol=1e-5)

    # --- Test 3: bf16 inputs (MXU path), gridded with partial output block ---
    B3, D3 = 384, 128
    x3 = jax.random.normal(k_x3, (B3, D3), jnp.float32).astype(jnp.bfloat16)
    w_bf = weight.astype(jnp.bfloat16)
    out_bf = jax.block_until_ready(
        loglinear_forward(x3, w_bf, bias, block_rows=256))
    ref_bf = loglinear_reference(x3, w_bf, bias)
    assert out_bf.dtype == jnp.bfloat16
    assert out_bf.shape == (B3, 1), out_bf.shape
    assert jnp.allclose(out_bf.astype(jnp.float32), ref_bf, atol=1e-2, rtol=1e-2)

    # TODO(synk): predict() (sigmoid + round) is a trivially XLA-fused epilogue
    # and is intentionally not duplicated inside the kernel.
    print("KERNEL_OK")
</pallas_src>

<mosaic_0001>
module attributes {stable_mosaic.version = 11 : i64} {
  func.func @_loglinear_kernel(%arg0: i32, %arg1: memref<8x128xf32, #tpu.memory_space<vmem>>, %arg2: memref<1x128xf32, #tpu.memory_space<vmem>>, %arg3: memref<1x1xf32, #tpu.memory_space<smem>>, %arg4: memref<8x1xf32, #tpu.memory_space<vmem>>) attributes {dimension_semantics = [#tpu.dimension_semantics<arbitrary>], iteration_bounds = array<i64: 1>, scalar_prefetch = 0 : i64, scratch_operands = 0 : i64, tpu.core_type = #tpu.core_type<tc>, window_params = [{pipeline_mode = #tpu.pipeline_mode<synchronous>, transform_indices = @transform_0, window_bounds = array<i64: 8, 128>}, {pipeline_mode = #tpu.pipeline_mode<synchronous>, transform_indices = @transform_1, window_bounds = array<i64: 1, 128>}, {transform_indices = @transform_2, window_bounds = array<i64: 1, 1>}, {pipeline_mode = #tpu.pipeline_mode<synchronous>, transform_indices = @transform_3, window_bounds = array<i64: 8, 1>}]} {
    %c0 = arith.constant 0 : index
    %c0_0 = arith.constant 0 : index
    %0 = vector.load %arg1[%c0, %c0_0] : memref<8x128xf32, #tpu.memory_space<vmem>>, vector<8x128xf32>
    %c0_1 = arith.constant 0 : index
    %c0_2 = arith.constant 0 : index
    %1 = vector.load %arg2[%c0_1, %c0_2] : memref<1x128xf32, #tpu.memory_space<vmem>>, vector<1x128xf32>
    %2 = vector.broadcast %1 : vector<1x128xf32> to vector<8x128xf32>
    %3 = arith.mulf %0, %2 : vector<8x128xf32>
    %cst = arith.constant dense<0.000000e+00> : vector<8xf32>
    %4 = vector.multi_reduction <add>, %3, %cst [1] : vector<8x128xf32> to vector<8xf32>
    %5 = vector.shape_cast %4 : vector<8xf32> to vector<8x1xf32>
    %c0_3 = arith.constant 0 : index
    %c0_4 = arith.constant 0 : index
    %6 = memref.load %arg3[%c0_3, %c0_4] : memref<1x1xf32, #tpu.memory_space<smem>>
    %7 = vector.broadcast %6 : f32 to vector<8x1xf32>
    %8 = arith.addf %5, %7 : vector<8x1xf32>
    %c0_5 = arith.constant 0 : index
    %c0_6 = arith.constant 0 : index
    %9 = vector.load %arg4[%c0_5, %c0_6] : memref<8x1xf32, #tpu.memory_space<vmem>>, vector<8x1xf32>
    tpu.vector_store %arg4[%c0_5, %c0_6], %8 {strides = array<i32>} : memref<8x1xf32, #tpu.memory_space<vmem>>, vector<8x1xf32>,
    return
  }
  func.func @transform_0(%arg0: i32) -> (i32, i32) {
    %c0_i32 = arith.constant 0 : i32
    %c0_i32_0 = arith.constant 0 : i32
    %c0_i32_1 = arith.constant 0 : i32
    return %c0_i32, %c0_i32_0 : i32, i32
  }
  func.func @transform_1(%arg0: i32) -> (i32, i32) {
    %c0_i32 = arith.constant 0 : i32
    %c0_i32_0 = arith.constant 0 : i32
    %c0_i32_1 = arith.constant 0 : i32
    return %c0_i32, %c0_i32_0 : i32, i32
  }
  func.func @transform_2(%arg0: i32) -> (i32, i32) {
    %c0_i32 = arith.constant 0 : i32
    %c0_i32_0 = arith.constant 0 : i32
    %c0_i32_1 = arith.constant 0 : i32
    return %c0_i32, %c0_i32_0 : i32, i32
  }
  func.func @transform_3(%arg0: i32) -> (i32, i32) {
    %c0_i32 = arith.constant 0 : i32
    %c0_i32_0 = arith.constant 0 : i32
    %c0_i32_1 = arith.constant 0 : i32
    return %c0_i32, %c0_i32_0 : i32, i32
  }
}

</mosaic_0001>

<bundles_post_ra>
// kernel: tpu_custom_call.1
= control target key start
LH: loop header
LB: loop body
LE: loop exit
PB: predicated region body
PF: predicated region fallthrough
CT: control target
= control target key end

     0   :  { %9 = vsyncpa [#allocation4], 0  ;;  %s74_s12 = smov [#allocation3]   ;;  %s116_s0 = inlined_call_operand.hbm [shape: f32[8,128], index: 0, kind: input, shape index: {}]   ;;  %s117_s1 = inlined_call_operand.vmem [shape: f32[1,128], index: 1, kind: input, shape index: {}]   ;;  %s118_s2 = inlined_call_operand.<no memory space> [shape: f32[1,1], index: 2, kind: input, shape index: {}]   ;;  %s119_s3 = inlined_call_operand.vmem [shape: f32[8,1], index: 3, kind: output, shape index: {}]  }
   0x1   :  { %s16_s13 = sshll.u32 %s74_s12, 4  ;;  %s50_s16 = scalar_lea.hbm %s116_s0, 128  ;;  %s17_s13 = int_to_ptr.vmem [resolvable:$true] %s16_s13 }
   0x2   :  { %p51_p0 = scmp.ne.s32.totalorder %s116_s0, %s50_s16  ;;  %p54_p1 = scmp.lt.u32.totalorder %s50_s16, %s116_s0 }
   0x4   :  { %p56_p2 = pnand %p54_p1, %p51_p0 }
   0x6   :  { %59 = shalt.err (!%p56_p2)
}
   0x7   :  { %s60_s21 = scalar_lea.vmem %s17_s13, 128  ;;  %p65_p4 = scmp.lt.s32.totalorder %s17_s13, %s17_s13 }
   0x8   :  { %p61_p3 = scmp.ne.s32.totalorder %s17_s13, %s60_s21  ;;  %p66_p5 = scmp.lt.s32.totalorder %s60_s21, %s60_s21 }
   0xa   :  { %p67_p6 = por %p66_p5, %p65_p4 }
   0xc   :  { %p68_p7 = pnand %p67_p6, %p61_p3 }
   0xe   :  { %71 = shalt.err (!%p68_p7)
}
   0xf   :  { %19 = dma.hbm_to_vmem [thread:$0]  %s116_s0, 128, %s17_s13, [#allocation4]  }
  0x10   :  { %72 = dma.done.wait [#allocation4], 128  }
  0x11   :  { %73 = vsyncadd [#allocation4], 4294967168  ;;  %v27_v0 = vld [vmem:[#allocation3] sm:$0xff]  ;;  %v39_v3 = vstv %s118_s2  ;;  %vm41_vm0 = vcmask 7168  }
  0x12   :  { %v48_v1 = vld [vmem:[%s117_s1] ss:$0 sm:$0xff] }
  0x13   :  { %v35_v2 = vmul.f32 %v48_v1, %v27_v0 }
  0x15   :  { %36 = vadd.xlane.f32.xlu0 %v35_v2 }
  0xa2   :  { %v37_v4 = vpop.xlane.xlu0 %36 }
  0xa3   :  { %v40_v5 = vadd.f32 %v39_v3, %v37_v4 }
  0xa5   :  { %42 = vst.msk [vmem:[%s119_s3] sm:$0xff] %vm41_vm0, %v40_v5 }
  0xa6   :  { %47 = vsyncpa [#allocation4], 1 }

</bundles_post_ra>
